<compile_context>
chip_gen: v7x
topology: tpu7x:2x2x1
jax: 0.10.0
libtpu: 0.0.40
codegen_flags: <defaults>
</compile_context>

<pallas_src>
import jax
import jax.numpy as jnp
from jax.experimental import pallas as pl
from jax.experimental.pallas import tpu as pltpu


def _fused_add_relu_conv1x1_kernel(a_ref, b_ref, w_ref, o_ref):
    # a_ref, b_ref: (N, Cin, HW)   w_ref: (Cout, Cin)   o_ref: (N, Cout, HW)
    w = w_ref[...].astype(jnp.bfloat16)
    n_batch = a_ref.shape[0]
    for n in range(n_batch):  # static trip count; N == 1 for this module
        x = jnp.maximum(a_ref[n] + b_ref[n], 0.0)  # VPU add + relu in f32
        y = jnp.dot(
            w, x.astype(jnp.bfloat16), preferred_element_type=jnp.float32
        )  # MXU matmul, f32 accumulate
        o_ref[n] = y.astype(o_ref.dtype)


def fused_add_relu_conv1x1(x121, x135, weight):
    """x121, x135: [N, Cin, H, W] f32; weight: [Cout, Cin, 1, 1] (1x1 conv, no bias)."""
    N, C, H, W = x121.shape
    Cout = weight.shape[0]
    HW = H * W

    # All reshapes below are layout-preserving (no data movement, no transposes).
    a = x121.reshape(N, C, HW)
    b = x135.reshape(N, C, HW)
    wt = weight.reshape(Cout, C)

    flops = 2 * N * HW * C * Cout + 2 * N * C * HW
    bytes_accessed = 4 * (2 * N * C * HW + Cout * C + N * Cout * HW)

    # TODO(synk): if N*H*W ever grows beyond a few thousand positions, switch to a
    # tiled grid over the spatial dim (parallel axis, ~512-wide blocks, weight kept
    # VMEM-resident) instead of whole-array VMEM residency (v7x has only 64 MiB).
    out = pl.pallas_call(
        _fused_add_relu_conv1x1_kernel,
        out_shape=jax.ShapeDtypeStruct((N, Cout, HW), x121.dtype),
        in_specs=[
            pl.BlockSpec(memory_space=pltpu.MemorySpace.VMEM),
            pl.BlockSpec(memory_space=pltpu.MemorySpace.VMEM),
            pl.BlockSpec(memory_space=pltpu.MemorySpace.VMEM),
        ],
        out_specs=pl.BlockSpec(memory_space=pltpu.MemorySpace.VMEM),
        cost_estimate=pl.CostEstimate(
            flops=flops, transcendentals=0, bytes_accessed=bytes_accessed
        ),
    )(a, b, wt)

    return out.reshape(N, Cout, H, W)


def reference(x121, x135, weight):
    x = jnp.maximum(x121 + x135, 0.0)
    # 1x1 conv, no bias: contraction over the channel dim.
    return jnp.einsum("nchw,oc->nohw", x, weight[:, :, 0, 0])


if __name__ == "__main__":
    key = jax.random.PRNGKey(0)
    k1, k2, k3 = jax.random.split(key, 3)

    N, C, H, W = 1, 208, 14, 14
    x121 = jax.random.normal(k1, (N, C, H, W), dtype=jnp.float32)
    x135 = jax.random.normal(k2, (N, C, H, W), dtype=jnp.float32)
    # Deterministic conv weight init (synthetic, not a checkpoint).
    weight = jax.random.normal(k3, (C, C, 1, 1), dtype=jnp.float32) * 0.05

    y = fused_add_relu_conv1x1(x121, x135, weight)
    jax.block_until_ready(y)

    y_ref = reference(x121, x135, weight)
    assert y.shape == (N, C, H, W), y.shape
    # bf16 MXU operands (f32 accumulate) -> relaxed tolerance vs the f32 reference.
    assert jnp.allclose(y, y_ref, atol=2e-2, rtol=2e-2), "mismatch vs reference"
    print("KERNEL_OK")
</pallas_src>

<mosaic_0001>
module attributes {stable_mosaic.version = 11 : i64} {
  func.func @_fused_add_relu_conv1x1_kernel(%arg0: memref<1x208x196xf32, #tpu.memory_space<vmem>>, %arg1: memref<1x208x196xf32, #tpu.memory_space<vmem>>, %arg2: memref<208x208xf32, #tpu.memory_space<vmem>>, %arg3: memref<1x208x196xf32, #tpu.memory_space<vmem>>) attributes {dimension_semantics = [], scalar_prefetch = 0 : i64, scratch_operands = 0 : i64, tpu.core_type = #tpu.core_type<tc>} {
    %c0 = arith.constant 0 : index
    %c0_0 = arith.constant 0 : index
    %0 = vector.load %arg2[%c0, %c0_0] : memref<208x208xf32, #tpu.memory_space<vmem>>, vector<208x208xf32>
    %1 = arith.truncf %0 : vector<208x208xf32> to vector<208x208xbf16>
    %c0_1 = arith.constant 0 : index
    %c0_2 = arith.constant 0 : index
    %c0_3 = arith.constant 0 : index
    %2 = vector.load %arg0[%c0_1, %c0_2, %c0_3] : memref<1x208x196xf32, #tpu.memory_space<vmem>>, vector<1x208x196xf32>
    %3 = vector.shape_cast %2 : vector<1x208x196xf32> to vector<208x196xf32>
    %c0_4 = arith.constant 0 : index
    %c0_5 = arith.constant 0 : index
    %c0_6 = arith.constant 0 : index
    %4 = vector.load %arg1[%c0_4, %c0_5, %c0_6] : memref<1x208x196xf32, #tpu.memory_space<vmem>>, vector<1x208x196xf32>
    %5 = vector.shape_cast %4 : vector<1x208x196xf32> to vector<208x196xf32>
    %6 = arith.addf %3, %5 : vector<208x196xf32>
    %cst = arith.constant 0.000000e+00 : f32
    %7 = vector.broadcast %cst : f32 to vector<208x196xf32>
    %8 = arith.maximumf %6, %7 : vector<208x196xf32>
    %9 = arith.truncf %8 : vector<208x196xf32> to vector<208x196xbf16>
    %cst_7 = arith.constant dense<0.000000e+00> : vector<208x196xf32>
    %10 = tpu.matmul %1, %9, %cst_7 {dimension_numbers = #tpu.dot_dimension_numbers<[1], [0], [0], [1], [0, 0, 1, 1], [], []>} : vector<208x208xbf16>, vector<208x196xbf16>, vector<208x196xf32> -> vector<208x196xf32>
    %c0_8 = arith.constant 0 : index
    %c0_9 = arith.constant 0 : index
    %c0_10 = arith.constant 0 : index
    %11 = vector.load %arg3[%c0_8, %c0_9, %c0_10] : memref<1x208x196xf32, #tpu.memory_space<vmem>>, vector<1x208x196xf32>
    %12 = vector.shape_cast %11 : vector<1x208x196xf32> to vector<208x196xf32>
    %13 = vector.shape_cast %10 : vector<208x196xf32> to vector<1x208x196xf32>
    tpu.vector_store %arg3[%c0_8, %c0_9, %c0_10], %13 {strides = array<i32>} : memref<1x208x196xf32, #tpu.memory_space<vmem>>, vector<1x208x196xf32>,
    return
  }
}

</mosaic_0001>

<bundles_post_ra>
// kernel: tpu_custom_call.1
= control target key start
LH: loop header
LB: loop body
LE: loop exit
PB: predicated region body
PF: predicated region fallthrough
CT: control target
= control target key end

     0   :  { %vm327_vm0 = vcmask 654336   ;;  %vm531_vm1 = vcmask 556032   ;;  %s1309_s0 = inlined_call_operand.vmem [shape: f32[1,208,196], index: 0, kind: input, shape index: {}]   ;;  %s1310_s1 = inlined_call_operand.vmem [shape: f32[1,208,196], index: 1, kind: input, shape index: {}]   ;;  %s1311_s2 = inlined_call_operand.vmem [shape: f32[208,208], index: 2, kind: input, shape index: {}]   ;;  %s1312_s3 = inlined_call_operand.vmem [shape: f32[1,208,196], index: 3, kind: output, shape index: {}]  }
   0x1   :  { %v94_v0 = vld [vmem:[%s1309_s0 + $0x8] sm:$0xff]  ;;  %v96_v1 = vld [vmem:[%s1309_s0 + $0x18] sm:$0xff]  ;;  %v93_v5 = vld [vmem:[%s1309_s0] sm:$0xff] }
   0x2   :  { %v146_v2 = vld [vmem:[%s1310_s1 + $0x8] sm:$0xff]  ;;  %v148_v3 = vld [vmem:[%s1310_s1 + $0x18] sm:$0xff]  ;;  %v95_v6 = vld [vmem:[%s1309_s0 + $0x10] sm:$0xff] }
   0x3   :  { %v198_v4 = vadd.f32 %v146_v2, %v94_v0  ;;  %v200_v7 = vadd.f32 %v148_v3, %v96_v1  ;;  %v145_v8 = vld [vmem:[%s1310_s1] sm:$0xff]  ;;  %v147_v9 = vld [vmem:[%s1310_s1 + $0x10] sm:$0xff]  ;;  %v98_v10 = vld [vmem:[%s1309_s0 + $0x28] sm:$0xff] }
   0x4   :  { %v197_v12 = vadd.f32 %v145_v8, %v93_v5  ;;  %v199_v13 = vadd.f32 %v147_v9, %v95_v6  ;;  %v100_v14 = vld [vmem:[%s1309_s0 + $0x38] sm:$0xff]  ;;  %v150_v15 = vld [vmem:[%s1310_s1 + $0x28] sm:$0xff]  ;;  %v97_v20 = vld [vmem:[%s1309_s0 + $0x20] sm:$0xff] }
   0x5   :  { %v250_v11 = vmax.f32 %v198_v4, 0.0  ;;  %v152_v16 = vld [vmem:[%s1310_s1 + $0x38] sm:$0xff]  ;;  %v252_v17 = vmax.f32 %v200_v7, 0.0  ;;  %v202_v18 = vadd.f32 %v150_v15, %v98_v10  ;;  %v99_v21 = vld [vmem:[%s1309_s0 + $0x30] sm:$0xff]  ;;  %v149_v22 = vld [vmem:[%s1310_s1 + $0x20] sm:$0xff] }
   0x6   :  { %v204_v19 = vadd.f32 %v152_v16, %v100_v14  ;;  %v249_v23 = vmax.f32 %v197_v12, 0.0  ;;  %v251_v24 = vmax.f32 %v199_v13, 0.0  ;;  %v151_v25 = vld [vmem:[%s1310_s1 + $0x30] sm:$0xff]  ;;  %v201_v26 = vadd.f32 %v149_v22, %v97_v20  ;;  %v102_v27 = vld [vmem:[%s1309_s0 + $0x48] sm:$0xff]  ;;  %v104_v28 = vld [vmem:[%s1309_s0 + $0x58] sm:$0xff] }
   0x7   :  { %v302_v29 = vpack.c.bf16 %v252_v17, %v250_v11  ;;  %v254_v30 = vmax.f32 %v202_v18, 0.0  ;;  %v203_v32 = vadd.f32 %v151_v25, %v99_v21  ;;  %v154_v33 = vld [vmem:[%s1310_s1 + $0x48] sm:$0xff]  ;;  %v156_v34 = vld [vmem:[%s1310_s1 + $0x58] sm:$0xff]  ;;  %v101_v35 = vld [vmem:[%s1309_s0 + $0x40] sm:$0xff] }
   0x8   :  { %v256_v31 = vmax.f32 %v204_v19, 0.0  ;;  %v301_v36 = vpack.c.bf16 %v251_v24, %v249_v23  ;;  %v253_v37 = vmax.f32 %v201_v26, 0.0  ;;  %v206_v38 = vadd.f32 %v154_v33, %v102_v27  ;;  %v103_v40 = vld [vmem:[%s1309_s0 + $0x50] sm:$0xff]  ;;  %v153_v41 = vld [vmem:[%s1310_s1 + $0x40] sm:$0xff]  ;;  %v106_v47 = vld [vmem:[%s1309_s0 + $0x68] sm:$0xff] }
   0x9   :  { %v208_v39 = vadd.f32 %v156_v34, %v104_v28  ;;  %v155_v42 = vld [vmem:[%s1310_s1 + $0x50] sm:$0xff]  ;;  %367 = vmatprep.subr.bf16.mxu0 %v302_v29  ;;  %600 = vmatprep.subr.bf16.mxu1 %v302_v29  ;;  %v255_v44 = vmax.f32 %v203_v32, 0.0  ;;  %v205_v45 = vadd.f32 %v153_v41, %v101_v35  ;;  %v108_v48 = vld [vmem:[%s1309_s0 + $0x78] sm:$0xff]  ;;  %v158_v49 = vld [vmem:[%s1310_s1 + $0x68] sm:$0xff] }
   0xa   :  { %v304_v43 = vpack.c.bf16 %v256_v31, %v254_v30  ;;  %v207_v46 = vadd.f32 %v155_v42, %v103_v40  ;;  %368 = vmatpush1.bf16.msra.mxu0 %v301_v36  ;;  %613 = vmatpush1.bf16.msra.mxu1 %v301_v36  ;;  %v258_v50 = vmax.f32 %v206_v38, 0.0  ;;  %v160_v52 = vld [vmem:[%s1310_s1 + $0x78] sm:$0xff]  ;;  %v210_v53 = vadd.f32 %v158_v49, %v106_v47  ;;  %v105_v54 = vld [vmem:[%s1309_s0 + $0x60] sm:$0xff]  ;;  %v107_v55 = vld [vmem:[%s1309_s0 + $0x70] sm:$0xff] }
   0xb   :  { %v260_v51 = vmax.f32 %v208_v39, 0.0  ;;  %v303_v56 = vpack.c.bf16 %v255_v44, %v253_v37  ;;  %v257_v57 = vmax.f32 %v205_v45, 0.0  ;;  %v212_v59 = vadd.f32 %v160_v52, %v108_v48  ;;  %v157_v60 = vld [vmem:[%s1310_s1 + $0x60] sm:$0xff]  ;;  %v159_v61 = vld [vmem:[%s1310_s1 + $0x70] sm:$0xff]  ;;  %v110_v62 = vld [vmem:[%s1309_s0 + $0x88] sm:$0xff] }
   0xc   :  { %369 = vmatprep.subr.bf16.mxu0 %v304_v43  ;;  %601 = vmatprep.subr.bf16.mxu1 %v304_v43  ;;  %v259_v58 = vmax.f32 %v207_v46, 0.0  ;;  %v262_v0 = vmax.f32 %v210_v53, 0.0  ;;  %v209_v1 = vadd.f32 %v157_v60, %v105_v54  ;;  %v211_v2 = vadd.f32 %v159_v61, %v107_v55  ;;  %v112_v3 = vld [vmem:[%s1309_s0 + $0x98] sm:$0xff]  ;;  %v162_v4 = vld [vmem:[%s1310_s1 + $0x88] sm:$0xff]  ;;  %v109_v9 = vld [vmem:[%s1309_s0 + $0x80] sm:$0xff] }
   0xd   :  { %v306_v63 = vpack.c.bf16 %v260_v51, %v258_v50  ;;  %v164_v5 = vld [vmem:[%s1310_s1 + $0x98] sm:$0xff]  ;;  %v264_v6 = vmax.f32 %v212_v59, 0.0  ;;  %v214_v7 = vadd.f32 %v162_v4, %v110_v62  ;;  %v111_v10 = vld [vmem:[%s1309_s0 + $0x90] sm:$0xff]  ;;  %v161_v11 = vld [vmem:[%s1310_s1 + $0x80] sm:$0xff] }
   0xe   :  { %v216_v8 = vadd.f32 %v164_v5, %v112_v3  ;;  %370 = vmatpush1.bf16.msra.mxu0 %v303_v56  ;;  %v305_v12 = vpack.c.bf16 %v259_v58, %v257_v57  ;;  %614 = vmatpush1.bf16.msra.mxu1 %v303_v56  ;;  %v261_v13 = vmax.f32 %v209_v1, 0.0  ;;  %v263_v14 = vmax.f32 %v211_v2, 0.0  ;;  %v163_v15 = vld [vmem:[%s1310_s1 + $0x90] sm:$0xff]  ;;  %v114_v17 = vld [vmem:[%s1309_s0 + $0xa8] sm:$0xff]  ;;  %v116_v18 = vld [vmem:[%s1309_s0 + $0xb8] sm:$0xff] }
   0xf   :  { %v213_v16 = vadd.f32 %v161_v11, %v109_v9  ;;  %371 = vmatprep.subr.bf16.mxu0 %v306_v63  ;;  %v308_v19 = vpack.c.bf16 %v264_v6, %v262_v0  ;;  %602 = vmatprep.subr.bf16.mxu1 %v306_v63  ;;  %v266_v20 = vmax.f32 %v214_v7, 0.0  ;;  %v215_v22 = vadd.f32 %v163_v15, %v111_v10  ;;  %v166_v23 = vld [vmem:[%s1310_s1 + $0xa8] sm:$0xff]  ;;  %v168_v24 = vld [vmem:[%s1310_s1 + $0xb8] sm:$0xff]  ;;  %v113_v25 = vld [vmem:[%s1309_s0 + $0xa0] sm:$0xff] }
  0x10   :  { %v268_v21 = vmax.f32 %v216_v8, 0.0  ;;  %v218_v26 = vadd.f32 %v166_v23, %v114_v17  ;;  %v220_v27 = vadd.f32 %v168_v24, %v116_v18  ;;  %v115_v28 = vld [vmem:[%s1309_s0 + $0xb0] sm:$0xff]  ;;  %v165_v29 = vld [vmem:[%s1310_s1 + $0xa0] sm:$0xff]  ;;  %v307_v31 = vpack.c.bf16 %v263_v14, %v261_v13  ;;  %v118_v34 = vld [vmem:[%s1309_s0 + $0xc8] sm:$0xff] }
  0x11   :  { %v167_v30 = vld [vmem:[%s1310_s1 + $0xb0] sm:$0xff]  ;;  %v265_v32 = vmax.f32 %v213_v16, 0.0  ;;  %v267_v33 = vmax.f32 %v215_v22, 0.0  ;;  %v120_v35 = vld [vmem:[%s1309_s0 + $0xd8] sm:$0xff]  ;;  %v170_v36 = vld [vmem:[%s1310_s1 + $0xc8] sm:$0xff]  ;;  %v217_v38 = vadd.f32 %v165_v29, %v113_v25 }
  0x12   :  { %372 = vmatpush1.bf16.msra.mxu0 %v305_v12  ;;  %615 = vmatpush1.bf16.msra.mxu1 %v305_v12  ;;  %v310_v37 = vpack.c.bf16 %v268_v21, %v266_v20  ;;  %v219_v39 = vadd.f32 %v167_v30, %v115_v28  ;;  %v172_v40 = vld [vmem:[%s1310_s1 + $0xd8] sm:$0xff]  ;;  %v117_v41 = vld [vmem:[%s1309_s0 + $0xc0] sm:$0xff]  ;;  %v119_v42 = vld [vmem:[%s1309_s0 + $0xd0] sm:$0xff]  ;;  %v270_v43 = vmax.f32 %v218_v26, 0.0  ;;  %v272_v44 = vmax.f32 %v220_v27, 0.0 }
  0x13   :  { %373 = vmatprep.subr.bf16.mxu0 %v308_v19  ;;  %603 = vmatprep.subr.bf16.mxu1 %v308_v19  ;;  %v222_v45 = vadd.f32 %v170_v36, %v118_v34  ;;  %v224_v46 = vadd.f32 %v172_v40, %v120_v35  ;;  %v169_v47 = vld [vmem:[%s1310_s1 + $0xc0] sm:$0xff]  ;;  %v171_v48 = vld [vmem:[%s1310_s1 + $0xd0] sm:$0xff]  ;;  %v122_v49 = vld [vmem:[%s1309_s0 + $0xe8] sm:$0xff]  ;;  %v309_v53 = vpack.c.bf16 %v267_v33, %v265_v32  ;;  %v269_v57 = vmax.f32 %v217_v38, 0.0 }
  0x14   :  { %v124_v50 = vld [vmem:[%s1309_s0 + $0xf8] sm:$0xff]  ;;  %v174_v51 = vld [vmem:[%s1310_s1 + $0xe8] sm:$0xff]  ;;  %v221_v54 = vadd.f32 %v169_v47, %v117_v41  ;;  %v223_v55 = vadd.f32 %v171_v48, %v119_v42  ;;  %v121_v56 = vld [vmem:[%s1309_s0 + $0xe0] sm:$0xff]  ;;  %v271_v58 = vmax.f32 %v219_v39, 0.0  ;;  %v312_v0 = vpack.c.bf16 %v272_v44, %v270_v43 }
  0x15   :  { %v176_v52 = vld [vmem:[%s1310_s1 + $0xf8] sm:$0xff]  ;;  %v226_v59 = vadd.f32 %v174_v51, %v122_v49  ;;  %v123_v61 = vld [vmem:[%s1309_s0 + $0xf0] sm:$0xff]  ;;  %v173_v62 = vld [vmem:[%s1310_s1 + $0xe0] sm:$0xff]  ;;  %v274_v1 = vmax.f32 %v222_v45, 0.0  ;;  %v276_v2 = vmax.f32 %v224_v46, 0.0 }
  0x16   :  { %374 = vmatpush1.bf16.msra.mxu0 %v307_v31  ;;  %616 = vmatpush1.bf16.msra.mxu1 %v307_v31  ;;  %v228_v60 = vadd.f32 %v176_v52, %v124_v50  ;;  %v175_v63 = vld [vmem:[%s1310_s1 + $0xf0] sm:$0xff]  ;;  %v126_v3 = vld [vmem:[%s1309_s0 + $0x108] sm:$0xff]  ;;  %v128_v4 = vld [vmem:[%s1309_s0 + $0x118] sm:$0xff]  ;;  %v273_v7 = vmax.f32 %v221_v54, 0.0  ;;  %v275_v8 = vmax.f32 %v223_v55, 0.0  ;;  %v225_v9 = vadd.f32 %v173_v62, %v121_v56 }
  0x17   :  { %375 = vmatprep.subr.bf16.mxu0 %v310_v37  ;;  %604 = vmatprep.subr.bf16.mxu1 %v310_v37  ;;  %v178_v5 = vld [vmem:[%s1310_s1 + $0x108] sm:$0xff]  ;;  %v180_v6 = vld [vmem:[%s1310_s1 + $0x118] sm:$0xff]  ;;  %v227_v10 = vadd.f32 %v175_v63, %v123_v61  ;;  %v311_v11 = vpack.c.bf16 %v271_v58, %v269_v57  ;;  %v278_v12 = vmax.f32 %v226_v59, 0.0  ;;  %v125_v14 = vld [vmem:[%s1309_s0 + $0x100] sm:$0xff]  ;;  %v314_v16 = vpack.c.bf16 %v276_v2, %v274_v1 }
  0x18   :  { %v280_v13 = vmax.f32 %v228_v60, 0.0  ;;  %v127_v15 = vld [vmem:[%s1309_s0 + $0x110] sm:$0xff]  ;;  %v230_v17 = vadd.f32 %v178_v5, %v126_v3  ;;  %v232_v18 = vadd.f32 %v180_v6, %v128_v4  ;;  %v177_v19 = vld [vmem:[%s1310_s1 + $0x100] sm:$0xff]  ;;  %v130_v21 = vld [vmem:[%s1309_s0 + $0x128] sm:$0xff]  ;;  %v313_v25 = vpack.c.bf16 %v275_v8, %v273_v7 }
  0x19   :  { %v179_v20 = vld [vmem:[%s1310_s1 + $0x110] sm:$0xff]  ;;  %v132_v22 = vld [vmem:[%s1309_s0 + $0x138] sm:$0xff]  ;;  %v182_v23 = vld [vmem:[%s1310_s1 + $0x128] sm:$0xff]  ;;  %v277_v26 = vmax.f32 %v225_v9, 0.0  ;;  %v279_v27 = vmax.f32 %v227_v10, 0.0  ;;  %v229_v31 = vadd.f32 %v177_v19, %v125_v14 }
  0x1a   :  { %376 = vmatpush1.bf16.msra.mxu0 %v309_v53  ;;  %617 = vmatpush1.bf16.msra.mxu1 %v309_v53  ;;  %v184_v24 = vld [vmem:[%s1310_s1 + $0x138] sm:$0xff]  ;;  %v129_v28 = vld [vmem:[%s1309_s0 + $0x120] sm:$0xff]  ;;  %v316_v30 = vpack.c.bf16 %v280_v13, %v278_v12  ;;  %v231_v32 = vadd.f32 %v179_v20, %v127_v15  ;;  %v131_v33 = vld [vmem:[%s1309_s0 + $0x130] sm:$0xff]  ;;  %v282_v36 = vmax.f32 %v230_v17, 0.0  ;;  %v284_v37 = vmax.f32 %v232_v18, 0.0 }
  0x1b   :  { %377 = vmatprep.subr.bf16.mxu0 %v312_v0  ;;  %605 = vmatprep.subr.bf16.mxu1 %v312_v0  ;;  %v181_v29 = vld [vmem:[%s1310_s1 + $0x120] sm:$0xff]  ;;  %v183_v34 = vld [vmem:[%s1310_s1 + $0x130] sm:$0xff]  ;;  %v134_v35 = vld [vmem:[%s1309_s0 + $0x148] sm:$0xff]  ;;  %v234_v38 = vadd.f32 %v182_v23, %v130_v21  ;;  %v236_v39 = vadd.f32 %v184_v24, %v132_v22  ;;  %v315_v44 = vpack.c.bf16 %v279_v27, %v277_v26  ;;  %v281_v47 = vmax.f32 %v229_v31, 0.0 }
  0x1c   :  { %v136_v40 = vld [vmem:[%s1309_s0 + $0x158] sm:$0xff]  ;;  %v186_v41 = vld [vmem:[%s1310_s1 + $0x148] sm:$0xff]  ;;  %v233_v43 = vadd.f32 %v181_v29, %v129_v28  ;;  %v235_v45 = vadd.f32 %v183_v34, %v131_v33  ;;  %v133_v46 = vld [vmem:[%s1309_s0 + $0x140] sm:$0xff]  ;;  %v283_v48 = vmax.f32 %v231_v32, 0.0  ;;  %v318_v54 = vpack.c.bf16 %v284_v37, %v282_v36 }
  0x1d   :  { %v188_v42 = vld [vmem:[%s1310_s1 + $0x158] sm:$0xff]  ;;  %v238_v49 = vadd.f32 %v186_v41, %v134_v35  ;;  %v135_v51 = vld [vmem:[%s1309_s0 + $0x150] sm:$0xff]  ;;  %v185_v52 = vld [vmem:[%s1310_s1 + $0x140] sm:$0xff]  ;;  %v286_v55 = vmax.f32 %v234_v38, 0.0  ;;  %v288_v56 = vmax.f32 %v236_v39, 0.0 }
  0x1e   :  { %378 = vmatpush1.bf16.msra.mxu0 %v311_v11  ;;  %618 = vmatpush1.bf16.msra.mxu1 %v311_v11  ;;  %v240_v50 = vadd.f32 %v188_v42, %v136_v40  ;;  %v187_v53 = vld [vmem:[%s1310_s1 + $0x150] sm:$0xff]  ;;  %v138_v57 = vld [vmem:[%s1309_s0 + $0x168] sm:$0xff]  ;;  %v140_v58 = vld [vmem:[%s1309_s0 + $0x178] sm:$0xff]  ;;  %v285_v60 = vmax.f32 %v233_v43, 0.0  ;;  %v287_v0 = vmax.f32 %v235_v45, 0.0  ;;  %v237_v1 = vadd.f32 %v185_v52, %v133_v46 }
  0x1f   :  { %379 = vmatprep.subr.bf16.mxu0 %v314_v16  ;;  %606 = vmatprep.subr.bf16.mxu1 %v314_v16  ;;  %v16_v59 = vld [vmem:[%s1311_s2 + $0x8] sm:$0xff]  ;;  %v192_v62 = vld [vmem:[%s1310_s1 + $0x178] sm:$0xff]  ;;  %v239_v2 = vadd.f32 %v187_v53, %v135_v51  ;;  %v317_v6 = vpack.c.bf16 %v283_v48, %v281_v47  ;;  %v290_v7 = vmax.f32 %v238_v49, 0.0  ;;  %v137_v9 = vld [vmem:[%s1309_s0 + $0x160] sm:$0xff]  ;;  %v320_v12 = vpack.c.bf16 %v288_v56, %v286_v55 }
  0x20   :  { %v190_v61 = vld [vmem:[%s1310_s1 + $0x168] sm:$0xff]  ;;  %v18_v63 = vld [vmem:[%s1311_s2 + $0x18] sm:$0xff]  ;;  %v292_v8 = vmax.f32 %v240_v50, 0.0  ;;  %v139_v10 = vld [vmem:[%s1309_s0 + $0x170] sm:$0xff]  ;;  %v244_v14 = vadd.f32 %v192_v62, %v140_v58  ;;  %v319_v21 = vpack.c.bf16 %v287_v0, %v285_v60  ;;  %v289_v22 = vmax.f32 %v237_v1, 0.0 }
  0x21   :  { %v68_v3 = vpack.c.bf16 %v18_v63, %v16_v59  ;;  %v44_v4 = vld [vmem:[%s1311_s2 + $0xe8] sm:$0xff]  ;;  %v46_v5 = vld [vmem:[%s1311_s2 + $0xf8] sm:$0xff]  ;;  %v242_v13 = vadd.f32 %v190_v61, %v138_v57  ;;  %v189_v15 = vld [vmem:[%s1310_s1 + $0x160] sm:$0xff]  ;;  %v291_v23 = vmax.f32 %v239_v2, 0.0 }
  0x22   :  { %380 = vmatpush1.bf16.msra.mxu0 %v313_v25  ;;  %619 = vmatpush1.bf16.msra.mxu1 %v313_v25  ;;  %v82_v11 = vpack.c.bf16 %v46_v5, %v44_v4  ;;  %v191_v16 = vld [vmem:[%s1310_s1 + $0x170] sm:$0xff]  ;;  %v142_v17 = vld [vmem:[%s1309_s0 + $0x188] sm:$0xff]  ;;  %v144_v18 = vld [vmem:[%s1309_s0 + $0x198] sm:$0xff]  ;;  %v322_v24 = vpack.c.bf16 %v292_v8, %v290_v7  ;;  %v241_v25 = vadd.f32 %v189_v15, %v137_v9  ;;  %v296_v29 = vmax.f32 %v244_v14, 0.0 }
  0x23   :  { %381 = vmatprep.subr.bf16.mxu0 %v316_v30  ;;  %607 = vmatprep.subr.bf16.mxu1 %v316_v30  ;;  %v194_v19 = vld [vmem:[%s1310_s1 + $0x188] sm:$0xff]  ;;  %v196_v20 = vld [vmem:[%s1310_s1 + $0x198] sm:$0xff]  ;;  %v243_v26 = vadd.f32 %v191_v16, %v139_v10  ;;  %v141_v27 = vld [vmem:[%s1309_s0 + $0x180] sm:$0xff]  ;;  %v294_v28 = vmax.f32 %v242_v13, 0.0  ;;  %v321_v35 = vpack.c.bf16 %v291_v23, %v289_v22 }
  0x24   :  { %587 = vmatprep.mubr.msk.bf16.mxu0 %vm327_vm0, %v68_v3  ;;  %594 = vmatprep.mubr.msk.bf16.mxu1 %vm327_vm0, %v82_v11  ;;  %v246_v30 = vadd.f32 %v194_v19, %v142_v17  ;;  %v248_v31 = vadd.f32 %v196_v20, %v144_v18  ;;  %v143_v32 = vld [vmem:[%s1309_s0 + $0x190] sm:$0xff]  ;;  %v193_v33 = vld [vmem:[%s1310_s1 + $0x180] sm:$0xff]  ;;  %v293_v36 = vmax.f32 %v241_v25, 0.0  ;;  %v20_v52 = vld [vmem:[%s1311_s2 + $0x28] sm:$0xff] }
  0x25   :  { %v195_v34 = vld [vmem:[%s1310_s1 + $0x190] sm:$0xff]  ;;  %v295_v37 = vmax.f32 %v243_v26, 0.0  ;;  %v245_v38 = vadd.f32 %v193_v33, %v141_v27  ;;  %v324_v40 = vpack.c.bf16 %v296_v29, %v294_v28  ;;  %v15_v47 = vld [vmem:[%s1311_s2] sm:$0xff]  ;;  %v22_v53 = vld [vmem:[%s1311_s2 + $0x38] sm:$0xff] }
  0x26   :  { %382 = vmatpush1.bf16.msra.mxu0 %v315_v44  ;;  %620 = vmatpush1.bf16.msra.mxu1 %v315_v44  ;;  %v247_v39 = vadd.f32 %v195_v34, %v143_v32  ;;  %v298_v41 = vmax.f32 %v246_v30, 0.0  ;;  %v300_v42 = vmax.f32 %v248_v31, 0.0  ;;  %v17_v48 = vld [vmem:[%s1311_s2 + $0x10] sm:$0xff]  ;;  %v43_v50 = vld [vmem:[%s1311_s2 + $0xe0] sm:$0xff]  ;;  %v50_v55 = vld [vmem:[%s1311_s2 + $0x118] sm:$0xff]  ;;  %v70_v58 = vpack.c.bf16 %v22_v53, %v20_v52 }
  0x27   :  { %383 = vmatprep.subr.bf16.mxu0 %v318_v54  ;;  %608 = vmatprep.subr.bf16.mxu1 %v318_v54  ;;  %v323_v43 = vpack.c.bf16 %v295_v37, %v293_v36  ;;  %v297_v44 = vmax.f32 %v245_v38, 0.0  ;;  %v45_v51 = vld [vmem:[%s1311_s2 + $0xf0] sm:$0xff]  ;;  %v48_v54 = vld [vmem:[%s1311_s2 + $0x108] sm:$0xff]  ;;  %v67_v56 = vpack.c.bf16 %v17_v48, %v15_v47  ;;  %v19_v60 = vld [vmem:[%s1311_s2 + $0x20] sm:$0xff] }
  0x28   :  { %v299_v45 = vmax.f32 %v247_v39, 0.0  ;;  %v326_v46 = vpack.c.bf16 %v300_v42, %v298_v41  ;;  %v81_v57 = vpack.c.bf16 %v45_v51, %v43_v50  ;;  %v84_v59 = vpack.c.bf16 %v50_v55, %v48_v54  ;;  %v21_v61 = vld [vmem:[%s1311_s2 + $0x30] sm:$0xff]  ;;  %v47_v62 = vld [vmem:[%s1311_s2 + $0x100] sm:$0xff]  ;;  %v24_v0 = vld [vmem:[%s1311_s2 + $0x48] sm:$0xff] }
  0x29   :  { %v49_v63 = vld [vmem:[%s1311_s2 + $0x110] sm:$0xff]  ;;  %v26_v1 = vld [vmem:[%s1311_s2 + $0x58] sm:$0xff]  ;;  %v52_v2 = vld [vmem:[%s1311_s2 + $0x128] sm:$0xff]  ;;  %v69_v4 = vpack.c.bf16 %v21_v61, %v19_v60 }
  0x2a   :  { %384 = vmatpush1.bf16.msra.mxu0 %v317_v6  ;;  %621 = vmatpush1.bf16.msra.mxu1 %v317_v6  ;;  %v325_v49 = vpack.c.bf16 %v299_v45, %v297_v44  ;;  %v54_v3 = vld [vmem:[%s1311_s2 + $0x138] sm:$0xff]  ;;  %v83_v5 = vpack.c.bf16 %v49_v63, %v47_v62  ;;  %v72_v6 = vpack.c.bf16 %v26_v1, %v24_v0  ;;  %v23_v8 = vld [vmem:[%s1311_s2 + $0x40] sm:$0xff]  ;;  %v25_v9 = vld [vmem:[%s1311_s2 + $0x50] sm:$0xff] }
  0x2b   :  { %385 = vmatprep.subr.bf16.mxu0 %v320_v12  ;;  %609 = vmatprep.subr.bf16.mxu1 %v320_v12  ;;  %v86_v7 = vpack.c.bf16 %v54_v3, %v52_v2  ;;  %v51_v10 = vld [vmem:[%s1311_s2 + $0x120] sm:$0xff]  ;;  %v53_v11 = vld [vmem:[%s1311_s2 + $0x130] sm:$0xff]  ;;  %v28_v12 = vld [vmem:[%s1311_s2 + $0x68] sm:$0xff]  ;;  %v71_v16 = vpack.c.bf16 %v25_v9, %v23_v8 }
  0x2c   :  { %v30_v13 = vld [vmem:[%s1311_s2 + $0x78] sm:$0xff]  ;;  %v56_v14 = vld [vmem:[%s1311_s2 + $0x148] sm:$0xff]  ;;  %v85_v17 = vpack.c.bf16 %v53_v11, %v51_v10  ;;  %v27_v20 = vld [vmem:[%s1311_s2 + $0x60] sm:$0xff] }
  0x2d   :  { %v58_v15 = vld [vmem:[%s1311_s2 + $0x158] sm:$0xff]  ;;  %v74_v18 = vpack.c.bf16 %v30_v13, %v28_v12  ;;  %v55_v22 = vld [vmem:[%s1311_s2 + $0x140] sm:$0xff]  ;;  %v57_v23 = vld [vmem:[%s1311_s2 + $0x150] sm:$0xff] }
  0x2e   :  { %386 = vmatpush1.bf16.msra.mxu0 %v319_v21  ;;  %622 = vmatpush1.bf16.msra.mxu1 %v319_v21  ;;  %v88_v19 = vpack.c.bf16 %v58_v15, %v56_v14  ;;  %v29_v21 = vld [vmem:[%s1311_s2 + $0x70] sm:$0xff]  ;;  %v34_v25 = vld [vmem:[%s1311_s2 + $0x98] sm:$0xff]  ;;  %v60_v26 = vld [vmem:[%s1311_s2 + $0x168] sm:$0xff]  ;;  %v87_v29 = vpack.c.bf16 %v57_v23, %v55_v22 }
  0x2f   :  { %387 = vmatprep.subr.bf16.mxu0 %v322_v24  ;;  %610 = vmatprep.subr.bf16.mxu1 %v322_v24  ;;  %v32_v24 = vld [vmem:[%s1311_s2 + $0x88] sm:$0xff]  ;;  %v62_v27 = vld [vmem:[%s1311_s2 + $0x178] sm:$0xff]  ;;  %v73_v28 = vpack.c.bf16 %v29_v21, %v27_v20  ;;  %v31_v32 = vld [vmem:[%s1311_s2 + $0x80] sm:$0xff] }
  0x30   :  { %v76_v30 = vpack.c.bf16 %v34_v25, %v32_v24  ;;  %v90_v31 = vpack.c.bf16 %v62_v27, %v60_v26  ;;  %v33_v33 = vld [vmem:[%s1311_s2 + $0x90] sm:$0xff]  ;;  %v59_v34 = vld [vmem:[%s1311_s2 + $0x160] sm:$0xff]  ;;  %v36_v36 = vld [vmem:[%s1311_s2 + $0xa8] sm:$0xff] }
  0x31   :  { %v38_v37 = vld [vmem:[%s1311_s2 + $0xb8] sm:$0xff]  ;;  %v64_v38 = vld [vmem:[%s1311_s2 + $0x188] sm:$0xff]  ;;  %v35_v44 = vld [vmem:[%s1311_s2 + $0xa0] sm:$0xff] }
  0x32   :  { %388 = vmatpush1.bf16.msra.mxu0 %v321_v35  ;;  %623 = vmatpush1.bf16.msra.mxu1 %v321_v35  ;;  %v61_v35 = vld [vmem:[%s1311_s2 + $0x170] sm:$0xff]  ;;  %v66_v39 = vld [vmem:[%s1311_s2 + $0x198] sm:$0xff]  ;;  %v78_v42 = vpack.c.bf16 %v38_v37, %v36_v36  ;;  %v40_v48 = vld [vmem:[%s1311_s2 + $0xc8] sm:$0xff] }
  0x33   :  { %389 = vmatprep.subr.bf16.mxu0 %v324_v40  ;;  %611 = vmatprep.subr.bf16.mxu1 %v324_v40  ;;  %v75_v40 = vpack.c.bf16 %v33_v33, %v31_v32  ;;  %v89_v41 = vpack.c.bf16 %v61_v35, %v59_v34  ;;  %v37_v45 = vld [vmem:[%s1311_s2 + $0xb0] sm:$0xff]  ;;  %v39_v53 = vld [vmem:[%s1311_s2 + $0xc0] sm:$0xff] }
  0x34   :  { %v65_v47 = vld [vmem:[%s1311_s2 + $0x190] sm:$0xff]  ;;  %v77_v50 = vpack.c.bf16 %v37_v45, %v35_v44 }
  0x35   :  { %v41_v54 = vld [vmem:[%s1311_s2 + $0xd0] sm:$0xff] }
  0x36   :  { %390 = vmatpush1.bf16.msra.mxu0 %v323_v43  ;;  %624 = vmatpush1.bf16.msra.mxu1 %v323_v43  ;;  %v92_v43 = vpack.c.bf16 %v66_v39, %v64_v38  ;;  %v79_v55 = vpack.c.bf16 %v41_v54, %v39_v53 }
  0x37   :  { %391 = vmatprep.subr.bf16.mxu0 %v326_v46  ;;  %612 = vmatprep.subr.bf16.mxu1 %v326_v46  ;;  %v63_v46 = vld [vmem:[%s1311_s2 + $0x180] sm:$0xff] }
  0x38   :  { %v91_v51 = vpack.c.bf16 %v65_v47, %v63_v46 }
  0x3a   :  { %392 = vmatpush1.bf16.msra.mxu0 %v325_v49  ;;  %625 = vmatpush1.bf16.msra.mxu1 %v325_v49  ;;  %v42_v49 = vld [vmem:[%s1311_s2 + $0xd8] sm:$0xff] }
  0x3b   :  { %v80_v52 = vpack.c.bf16 %v42_v49, %v40_v48 }
  0x3d   :  { %400 = vmatmul.mubr.bf16.vlgmr.msra.gmra.mrb[0].mxu0 %v67_v56  ;;  %470 = vmatmul.mubr.bf16.vlgmr.msra.gmra.mrb[0].mxu1 %v81_v57 }
  0x3e   :  { %588 = vmatprep.mubr.msk.bf16.mxu0 %vm327_vm0, %v70_v58  ;;  %595 = vmatprep.mubr.msk.bf16.mxu1 %vm327_vm0, %v84_v59 }
  0x45   :  { %410 = vmatmul.mubr.bf16.gmra.mrb[4].mxu0 %v69_v4  ;;  %480 = vmatmul.mubr.bf16.gmra.mrb[4].mxu1 %v83_v5 }
  0x46   :  { %589 = vmatprep.mubr.msk.bf16.mxu0 %vm327_vm0, %v72_v6  ;;  %596 = vmatprep.mubr.msk.bf16.mxu1 %vm327_vm0, %v86_v7 }
  0x4d   :  { %420 = vmatmul.mubr.bf16.gmra.mrb[8].mxu0 %v71_v16  ;;  %490 = vmatmul.mubr.bf16.gmra.mrb[8].mxu1 %v85_v17 }
  0x4e   :  { %590 = vmatprep.mubr.msk.bf16.mxu0 %vm327_vm0, %v74_v18  ;;  %597 = vmatprep.mubr.msk.bf16.mxu1 %vm327_vm0, %v88_v19 }
  0x55   :  { %430 = vmatmul.mubr.bf16.gmra.mrb[12].mxu0 %v73_v28  ;;  %500 = vmatmul.mubr.bf16.gmra.mrb[12].mxu1 %v87_v29 }
  0x56   :  { %591 = vmatprep.mubr.msk.bf16.mxu0 %vm327_vm0, %v76_v30  ;;  %598 = vmatprep.mubr.msk.bf16.mxu1 %vm327_vm0, %v90_v31 }
  0x5d   :  { %440 = vmatmul.mubr.bf16.gmra.mrb[16].mxu0 %v75_v40  ;;  %510 = vmatmul.mubr.bf16.gmra.mrb[16].mxu1 %v89_v41 }
  0x5e   :  { %592 = vmatprep.mubr.msk.bf16.mxu0 %vm327_vm0, %v78_v42  ;;  %599 = vmatprep.mubr.msk.bf16.mxu1 %vm327_vm0, %v92_v43 }
  0x65   :  { %450 = vmatmul.mubr.bf16.gmra.mrb[20].mxu0 %v77_v50  ;;  %520 = vmatmul.mubr.bf16.gmra.mrb[20].mxu1 %v91_v51 }
  0x66   :  { %593 = vmatprep.mubr.msk.bf16.mxu0 %vm327_vm0, %v80_v52 }
  0x6d   :  { %460 = vmatmul.mubr.bf16.gmra.mrb[24].mxu0 %v79_v55 }
 0x110   :  { %v401_v56 = vpop.f32.mrb[0].mxu0  ;;  %v471_v57 = vpop.f32.mrb[0].mxu1 }
 0x111   :  { %530 = vst [vmem:[%s1312_s3] sm:$0xff] %v401_v56  ;;  %v403_v58 = vpop.f32.mrb[1].mxu0  ;;  %559 = vst [vmem:[%s1312_s3 + $0xe0] sm:$0xff] %v471_v57  ;;  %v473_v59 = vpop.f32.mrb[1].mxu1 }
 0x112   :  { %532 = vst.msk [vmem:[%s1312_s3 + $0x8] sm:$0xff] %vm531_vm1, %v403_v58  ;;  %v405_v60 = vpop.f32.mrb[2].mxu0  ;;  %560 = vst.msk [vmem:[%s1312_s3 + $0xe8] sm:$0xff] %vm531_vm1, %v473_v59  ;;  %v475_v61 = vpop.f32.mrb[2].mxu1 }
 0x113   :  { %533 = vst [vmem:[%s1312_s3 + $0x10] sm:$0xff] %v405_v60  ;;  %v407_v62 = vpop.f32.mrb[3].mxu0  ;;  %561 = vst [vmem:[%s1312_s3 + $0xf0] sm:$0xff] %v475_v61  ;;  %v477_v63 = vpop.f32.mrb[3].mxu1 }
 0x114   :  { %534 = vst.msk [vmem:[%s1312_s3 + $0x18] sm:$0xff] %vm531_vm1, %v407_v62  ;;  %562 = vst.msk [vmem:[%s1312_s3 + $0xf8] sm:$0xff] %vm531_vm1, %v477_v63 }
 0x118   :  { %v411_v0 = vpop.f32.mrb[4].mxu0  ;;  %v481_v1 = vpop.f32.mrb[4].mxu1 }
 0x119   :  { %535 = vst [vmem:[%s1312_s3 + $0x20] sm:$0xff] %v411_v0  ;;  %v413_v2 = vpop.f32.mrb[5].mxu0  ;;  %563 = vst [vmem:[%s1312_s3 + $0x100] sm:$0xff] %v481_v1  ;;  %v483_v3 = vpop.f32.mrb[5].mxu1 }
 0x11a   :  { %536 = vst.msk [vmem:[%s1312_s3 + $0x28] sm:$0xff] %vm531_vm1, %v413_v2  ;;  %v415_v4 = vpop.f32.mrb[6].mxu0  ;;  %564 = vst.msk [vmem:[%s1312_s3 + $0x108] sm:$0xff] %vm531_vm1, %v483_v3  ;;  %v485_v5 = vpop.f32.mrb[6].mxu1 }
 0x11b   :  { %537 = vst [vmem:[%s1312_s3 + $0x30] sm:$0xff] %v415_v4  ;;  %v417_v6 = vpop.f32.mrb[7].mxu0  ;;  %565 = vst [vmem:[%s1312_s3 + $0x110] sm:$0xff] %v485_v5  ;;  %v487_v7 = vpop.f32.mrb[7].mxu1 }
 0x11c   :  { %538 = vst.msk [vmem:[%s1312_s3 + $0x38] sm:$0xff] %vm531_vm1, %v417_v6  ;;  %566 = vst.msk [vmem:[%s1312_s3 + $0x118] sm:$0xff] %vm531_vm1, %v487_v7 }
 0x120   :  { %v421_v8 = vpop.f32.mrb[8].mxu0  ;;  %v491_v9 = vpop.f32.mrb[8].mxu1 }
 0x121   :  { %539 = vst [vmem:[%s1312_s3 + $0x40] sm:$0xff] %v421_v8  ;;  %v423_v10 = vpop.f32.mrb[9].mxu0  ;;  %567 = vst [vmem:[%s1312_s3 + $0x120] sm:$0xff] %v491_v9  ;;  %v493_v11 = vpop.f32.mrb[9].mxu1 }
 0x122   :  { %540 = vst.msk [vmem:[%s1312_s3 + $0x48] sm:$0xff] %vm531_vm1, %v423_v10  ;;  %v425_v12 = vpop.f32.mrb[10].mxu0  ;;  %568 = vst.msk [vmem:[%s1312_s3 + $0x128] sm:$0xff] %vm531_vm1, %v493_v11  ;;  %v495_v13 = vpop.f32.mrb[10].mxu1 }
 0x123   :  { %541 = vst [vmem:[%s1312_s3 + $0x50] sm:$0xff] %v425_v12  ;;  %v427_v14 = vpop.f32.mrb[11].mxu0  ;;  %569 = vst [vmem:[%s1312_s3 + $0x130] sm:$0xff] %v495_v13  ;;  %v497_v15 = vpop.f32.mrb[11].mxu1 }
 0x124   :  { %542 = vst.msk [vmem:[%s1312_s3 + $0x58] sm:$0xff] %vm531_vm1, %v427_v14  ;;  %570 = vst.msk [vmem:[%s1312_s3 + $0x138] sm:$0xff] %vm531_vm1, %v497_v15 }
 0x128   :  { %v431_v16 = vpop.f32.mrb[12].mxu0  ;;  %v501_v17 = vpop.f32.mrb[12].mxu1 }
 0x129   :  { %543 = vst [vmem:[%s1312_s3 + $0x60] sm:$0xff] %v431_v16  ;;  %v433_v18 = vpop.f32.mrb[13].mxu0  ;;  %571 = vst [vmem:[%s1312_s3 + $0x140] sm:$0xff] %v501_v17  ;;  %v503_v19 = vpop.f32.mrb[13].mxu1 }
 0x12a   :  { %544 = vst.msk [vmem:[%s1312_s3 + $0x68] sm:$0xff] %vm531_vm1, %v433_v18  ;;  %v435_v20 = vpop.f32.mrb[14].mxu0  ;;  %572 = vst.msk [vmem:[%s1312_s3 + $0x148] sm:$0xff] %vm531_vm1, %v503_v19  ;;  %v505_v21 = vpop.f32.mrb[14].mxu1 }
 0x12b   :  { %545 = vst [vmem:[%s1312_s3 + $0x70] sm:$0xff] %v435_v20  ;;  %v437_v22 = vpop.f32.mrb[15].mxu0  ;;  %573 = vst [vmem:[%s1312_s3 + $0x150] sm:$0xff] %v505_v21  ;;  %v507_v23 = vpop.f32.mrb[15].mxu1 }
 0x12c   :  { %546 = vst.msk [vmem:[%s1312_s3 + $0x78] sm:$0xff] %vm531_vm1, %v437_v22  ;;  %574 = vst.msk [vmem:[%s1312_s3 + $0x158] sm:$0xff] %vm531_vm1, %v507_v23 }
 0x130   :  { %v441_v24 = vpop.f32.mrb[16].mxu0  ;;  %v511_v25 = vpop.f32.mrb[16].mxu1 }
 0x131   :  { %547 = vst [vmem:[%s1312_s3 + $0x80] sm:$0xff] %v441_v24  ;;  %v443_v26 = vpop.f32.mrb[17].mxu0  ;;  %575 = vst [vmem:[%s1312_s3 + $0x160] sm:$0xff] %v511_v25  ;;  %v513_v27 = vpop.f32.mrb[17].mxu1 }
 0x132   :  { %548 = vst.msk [vmem:[%s1312_s3 + $0x88] sm:$0xff] %vm531_vm1, %v443_v26  ;;  %v445_v28 = vpop.f32.mrb[18].mxu0  ;;  %576 = vst.msk [vmem:[%s1312_s3 + $0x168] sm:$0xff] %vm531_vm1, %v513_v27  ;;  %v515_v29 = vpop.f32.mrb[18].mxu1 }
 0x133   :  { %549 = vst [vmem:[%s1312_s3 + $0x90] sm:$0xff] %v445_v28  ;;  %v447_v30 = vpop.f32.mrb[19].mxu0  ;;  %577 = vst [vmem:[%s1312_s3 + $0x170] sm:$0xff] %v515_v29  ;;  %v517_v31 = vpop.f32.mrb[19].mxu1 }
 0x134   :  { %550 = vst.msk [vmem:[%s1312_s3 + $0x98] sm:$0xff] %vm531_vm1, %v447_v30  ;;  %578 = vst.msk [vmem:[%s1312_s3 + $0x178] sm:$0xff] %vm531_vm1, %v517_v31 }
 0x138   :  { %v451_v32 = vpop.f32.mrb[20].mxu0  ;;  %v521_v33 = vpop.f32.mrb[20].mxu1 }
 0x139   :  { %551 = vst [vmem:[%s1312_s3 + $0xa0] sm:$0xff] %v451_v32  ;;  %v453_v34 = vpop.f32.mrb[21].mxu0  ;;  %579 = vst [vmem:[%s1312_s3 + $0x180] sm:$0xff] %v521_v33  ;;  %v523_v35 = vpop.f32.mrb[21].mxu1 }
 0x13a   :  { %552 = vst.msk [vmem:[%s1312_s3 + $0xa8] sm:$0xff] %vm531_vm1, %v453_v34  ;;  %v455_v36 = vpop.f32.mrb[22].mxu0  ;;  %580 = vst.msk [vmem:[%s1312_s3 + $0x188] sm:$0xff] %vm531_vm1, %v523_v35  ;;  %v525_v37 = vpop.f32.mrb[22].mxu1 }
 0x13b   :  { %553 = vst [vmem:[%s1312_s3 + $0xb0] sm:$0xff] %v455_v36  ;;  %v457_v38 = vpop.f32.mrb[23].mxu0  ;;  %581 = vst [vmem:[%s1312_s3 + $0x190] sm:$0xff] %v525_v37  ;;  %v527_v39 = vpop.f32.mrb[23].mxu1 }
 0x13c   :  { %554 = vst.msk [vmem:[%s1312_s3 + $0xb8] sm:$0xff] %vm531_vm1, %v457_v38  ;;  %582 = vst.msk [vmem:[%s1312_s3 + $0x198] sm:$0xff] %vm531_vm1, %v527_v39 }
 0x140   :  { %v461_v40 = vpop.f32.mrb[24].mxu0 }
 0x141   :  { %555 = vst [vmem:[%s1312_s3 + $0xc0] sm:$0xff] %v461_v40  ;;  %v463_v41 = vpop.f32.mrb[25].mxu0 }
 0x142   :  { %556 = vst.msk [vmem:[%s1312_s3 + $0xc8] sm:$0xff] %vm531_vm1, %v463_v41  ;;  %v465_v42 = vpop.f32.mrb[26].mxu0 }
 0x143   :  { %557 = vst [vmem:[%s1312_s3 + $0xd0] sm:$0xff] %v465_v42  ;;  %v467_v43 = vpop.f32.mrb[27].mxu0 }
 0x144   :  { %558 = vst.msk [vmem:[%s1312_s3 + $0xd8] sm:$0xff] %vm531_vm1, %v467_v43 }

</bundles_post_ra>
